<compile_context>
chip_gen: v5e
topology: v5e:2x2
jax: 0.10.0
libtpu: 0.0.40
codegen_flags: <defaults>
</compile_context>

<pallas_src>
import jax
import jax.numpy as jnp
from jax.experimental import pallas as pl
from jax.experimental.pallas import tpu as pltpu


_LANES = 128                 # lane width of the input tile
_ALIGN = 8 * _LANES          # sublane x lane alignment unit (1024 elements)
_SMALL_B = 2048              # below this, plain JAX beats the kernel


def _linear_interleaved_kernel(x_ref, w_ref, b_ref, o_ref):
    # x_ref: (TR, 128)      lane-dense batch tile
    # w_ref: (128, O*128)   constant expansion*weight matrix (resident)
    # b_ref: (1,  O*128)    constant interleaved bias row    (resident)
    # o_ref: (TR, O*128)    lane-dense, already (B, O)-interleaved output tile
    y = jnp.dot(x_ref[...], w_ref[...],
                precision=jax.lax.Precision.HIGHEST,   # exact f32 products
                preferred_element_type=jnp.float32)
    o_ref[...] = (y + b_ref[...]).astype(o_ref.dtype)


def _pick_tile_rows(rows):
    """Largest row tile that divides `rows` and leaves >= 2 grid steps."""
    for cand in (2048, 1024, 512, 256, 128, 64, 32, 16, 8):
        if rows % cand == 0 and rows // cand >= 2:
            return cand
    return 8


def linear_pallas(x, weight, bias):
    """y = x @ weight.T + bias, with weight (O, 1), bias (O,), x (B, 1)."""
    B = x.shape[0]
    O = weight.shape[0]

    w_col = weight.reshape(O).astype(jnp.float32)      # (O,)
    b_vec = bias.reshape(O).astype(jnp.float32)        # (O,)

    def jax_path(xs):                                   # exact f32 broadcast FMA
        y = xs.astype(jnp.float32) * w_col[None, :] + b_vec[None, :]
        return y.astype(x.dtype)

    # Small-batch / non-f32 bypass: fixed kernel overhead dominates there, and
    # the Pallas path below assumes f32 (8, 128) tiling.
    if B < _SMALL_B or x.dtype != jnp.float32:
        return jax_path(x)

    C = _LANES
    OC = O * C
    bulk = (B // _ALIGN) * _ALIGN          # largest 1024-aligned prefix
    rows = bulk // C                       # multiple of 8, >= 16
    TR = _pick_tile_rows(rows)

    # Tiny constant operands:
    #   W_E[c, c*O + o] = W[o, 0]   (zero elsewhere)  -> lane interleave + weight
    #   b_row[0, c*O + o] = bias[o]
    eye = jnp.eye(C, dtype=jnp.float32)
    w_mat = jnp.einsum("rc,o->rco", eye, w_col).reshape(C, OC)
    b_row = jnp.tile(b_vec, C).reshape(1, OC)

    x_bulk = x if bulk == B else x[:bulk]
    x2d = x_bulk.reshape(rows, C)          # zero-copy when bulk == B

    y2d = pl.pallas_call(
        _linear_interleaved_kernel,
        out_shape=jax.ShapeDtypeStruct((rows, OC), x.dtype),
        grid=(rows // TR,),
        in_specs=[
            pl.BlockSpec((TR, C), lambda i: (i, 0)),    # x tiles
            pl.BlockSpec((C, OC), lambda i: (0, 0)),    # W_E, stays resident
            pl.BlockSpec((1, OC), lambda i: (0, 0)),    # bias row, resident
        ],
        out_specs=pl.BlockSpec((TR, OC), lambda i: (i, 0)),
        compiler_params=pltpu.CompilerParams(
            dimension_semantics=("parallel",)),         # shard across TCs (v7x)
        cost_estimate=pl.CostEstimate(
            flops=2 * rows * C * OC + rows * OC,
            transcendentals=0,
            bytes_accessed=4 * rows * C + 4 * rows * OC + 4 * C * OC + 4 * OC),
    )(x2d, w_mat, b_row)

    # Zero-copy un-layout: lanes are already interleaved as (..., element, o).
    y_bulk = y2d.reshape(bulk, O)
    if bulk == B:
        return y_bulk
    # Unaligned tail (< 1024 elements): pure JAX, then concatenate.
    return jnp.concatenate([y_bulk, jax_path(x[bulk:])], axis=0)


if __name__ == "__main__":
    key = jax.random.PRNGKey(0)
    kx1, kx2, kw, kb = jax.random.split(key, 4)

    out_features = 2
    # PyTorch nn.Linear(1, 2) default init: U(-1, 1) since fan_in = 1.
    weight = jax.random.uniform(kw, (out_features, 1), dtype=jnp.float32,
                                minval=-1.0, maxval=1.0)
    bias = jax.random.uniform(kb, (out_features,), dtype=jnp.float32,
                              minval=-1.0, maxval=1.0)

    def reference(xs):
        return xs * weight[:, 0][None, :] + bias[None, :]

    # (1) Pallas path: B = 4096 (1024-aligned -> zero wrapper copies, 2 grid steps).
    B_big = 4096
    x_big = jax.random.normal(kx1, (B_big, 1), dtype=jnp.float32)
    y_big = jax.block_until_ready(linear_pallas(x_big, weight, bias))
    assert y_big.shape == (B_big, out_features)
    assert jnp.allclose(y_big, reference(x_big), atol=1e-5, rtol=1e-5), \
        "Pallas path mismatch vs reference"

    # (2) Small-batch bypass path at a module-typical size.
    B_small = 8
    x_small = jax.random.normal(kx2, (B_small, 1), dtype=jnp.float32)
    y_small = jax.block_until_ready(linear_pallas(x_small, weight, bias))
    assert y_small.shape == (B_small, out_features)
    assert jnp.allclose(y_small, reference(x_small), atol=1e-6), \
        "bypass path mismatch vs reference"

    print("KERNEL_OK")
</pallas_src>

<mosaic_0001>
module attributes {stable_mosaic.version = 11 : i64} {
  func.func @_linear_interleaved_kernel(%arg0: i32, %arg1: memref<16x128xf32, #tpu.memory_space<vmem>>, %arg2: memref<128x256xf32, #tpu.memory_space<vmem>>, %arg3: memref<1x256xf32, #tpu.memory_space<vmem>>, %arg4: memref<16x256xf32, #tpu.memory_space<vmem>>) attributes {dimension_semantics = [#tpu.dimension_semantics<parallel>], iteration_bounds = array<i64: 2>, scalar_prefetch = 0 : i64, scratch_operands = 0 : i64, tpu.core_type = #tpu.core_type<tc>, window_params = [{transform_indices = @transform_0, window_bounds = array<i64: 16, 128>}, {pipeline_mode = #tpu.pipeline_mode<synchronous>, transform_indices = @transform_1, window_bounds = array<i64: 128, 256>}, {pipeline_mode = #tpu.pipeline_mode<synchronous>, transform_indices = @transform_2, window_bounds = array<i64: 1, 256>}, {transform_indices = @transform_3, window_bounds = array<i64: 16, 256>}]} {
    %c0 = arith.constant 0 : index
    %c0_0 = arith.constant 0 : index
    %0 = vector.load %arg1[%c0, %c0_0] : memref<16x128xf32, #tpu.memory_space<vmem>>, vector<16x128xf32>
    %c0_1 = arith.constant 0 : index
    %c0_2 = arith.constant 0 : index
    %1 = vector.load %arg2[%c0_1, %c0_2] : memref<128x256xf32, #tpu.memory_space<vmem>>, vector<128x256xf32>
    %cst = arith.constant dense<0.000000e+00> : vector<16x256xf32>
    %2 = tpu.matmul %0, %1, %cst {dimension_numbers = #tpu.dot_dimension_numbers<[1], [0], [0], [1], [0, 0, 1, 1], [], []>, precision = #tpu.contract_precision<fp32>} : vector<16x128xf32>, vector<128x256xf32>, vector<16x256xf32> -> vector<16x256xf32>
    %c0_3 = arith.constant 0 : index
    %c0_4 = arith.constant 0 : index
    %3 = vector.load %arg3[%c0_3, %c0_4] : memref<1x256xf32, #tpu.memory_space<vmem>>, vector<1x256xf32>
    %4 = vector.broadcast %3 : vector<1x256xf32> to vector<16x256xf32>
    %5 = arith.addf %2, %4 : vector<16x256xf32>
    %c0_5 = arith.constant 0 : index
    %c0_6 = arith.constant 0 : index
    %6 = vector.load %arg4[%c0_5, %c0_6] : memref<16x256xf32, #tpu.memory_space<vmem>>, vector<16x256xf32>
    tpu.vector_store %arg4[%c0_5, %c0_6], %5 {strides = array<i32>} : memref<16x256xf32, #tpu.memory_space<vmem>>, vector<16x256xf32>,
    return
  }
  func.func @transform_0(%arg0: i32) -> (i32, i32) {
    %c0_i32 = arith.constant 0 : i32
    %c0_i32_0 = arith.constant 0 : i32
    return %arg0, %c0_i32 : i32, i32
  }
  func.func @transform_1(%arg0: i32) -> (i32, i32) {
    %c0_i32 = arith.constant 0 : i32
    %c0_i32_0 = arith.constant 0 : i32
    %c0_i32_1 = arith.constant 0 : i32
    return %c0_i32, %c0_i32_0 : i32, i32
  }
  func.func @transform_2(%arg0: i32) -> (i32, i32) {
    %c0_i32 = arith.constant 0 : i32
    %c0_i32_0 = arith.constant 0 : i32
    %c0_i32_1 = arith.constant 0 : i32
    return %c0_i32, %c0_i32_0 : i32, i32
  }
  func.func @transform_3(%arg0: i32) -> (i32, i32) {
    %c0_i32 = arith.constant 0 : i32
    %c0_i32_0 = arith.constant 0 : i32
    return %arg0, %c0_i32 : i32, i32
  }
}

</mosaic_0001>

<bundles_post_ra>
// kernel: tpu_custom_call.1
= control target key start
LH: loop header
LB: loop body
LE: loop exit
PB: predicated region body
PF: predicated region fallthrough
CT: control target
= control target key end

     0   :  { %8 = vsyncpa [#allocation3], 0  ;;  %s2087_s0 = inlined_call_operand.hbm [shape: f32[32,128], index: 0, kind: input, shape index: {}]   ;;  %s2088_s1 = inlined_call_operand.hbm [shape: f32[128,256], index: 1, kind: input, shape index: {}]   ;;  %s2089_s2 = inlined_call_operand.hbm [shape: f32[1,256], index: 2, kind: input, shape index: {}]   ;;  %s2090_s3 = inlined_call_operand.hbm [shape: f32[32,256], index: 3, kind: output, shape index: {}]  }
   0x1   :  { %10 = vsyncpa [#allocation3 + $0x1], 0 }
   0x2   :  { %11 = vsyncpa [#allocation6], 0 }
   0x3   :  { %12 = vsyncpa [#allocation4], 0 }
   0x4   :  { %14 = vsyncpa [#allocation4 + $0x1], 0  ;;  %s1406_s12 = smov 0   ;;  %s1408_s13 = smov 0  }
   0x5   :  { %s1410_s14 = smov 0   ;;  %s1412_s15 = smov 0  }
   0x6 LB: > { %s1427_s16 = sadd.s32 4294967295, %s1376_s15   ;;  %s1121_s17 = sadd.s32 4294967294, %s1376_s15   ;;  %s1376_s15 = sphi %s1412_s15, %s2155_s15   ;;  %s1372_s14 = sphi %s1410_s14, %s2154_s14   ;;  %s1368_s13 = sphi %s1408_s13, %s2153_s13   ;;  %s1364_s12 = sphi %s1406_s12, %s2152_s12  }
   0x7   : > { %p40_p0 = scmp.ne.s32.totalorder %s1368_s13, %s1364_s12  ;;  %p41_p1 = scmp.eq.s32.totalorder %s1427_s16, 0 }
   0x8   : > { %p106_p2 = scmp.eq.s32.totalorder %s1427_s16, 1  ;;  %p112_p3 = scmp.eq.s32.totalorder %s1121_s17, 1 }
   0x9   : > { %p1436_p4 = por %p41_p1, %p40_p0  ;;  %p1122_p5 = scmp.ge.s32.totalorder %s1376_s15, 1 }
   0xa   : > { %p1441_p6 = por %p112_p3, %p40_p0  ;;  %p119_p7 = scmp.lt.s32.totalorder %s1376_s15, 3 }
   0xb   : > { %s130_s22 = sshll.u32 %s2088_s1, 4  ;;  %s1378_s24 = smov [#allocation5]   ;;  %s131_s22 = int_to_ptr.hbm [resolvable:$true] %s130_s22 }
   0xc   : > { %p1449_p8 = pnand %p1122_p5, %p119_p7  ;;  %s132_s25 = sshll.u32 %s1378_s24, 4  ;;  %s133_s25 = int_to_ptr.vmem [resolvable:$true] %s132_s25 }
   0xd   : > { %s145_s28 = sshll.u32 %s2089_s2, 4  ;;  %s1379_s29 = smov 256   ;;  %s146_s28 = int_to_ptr.hbm [resolvable:$true] %s145_s28 }
   0xe   : > { %p1155_p9 = pneg %p1449_p8  ;;  %s1380_s30 = smov 16  }
   0xf   : > { %s1381_s4 = smov [#allocation7]   ;;  %s1462_s6 = sadd.s32 1, %s1376_s15  }
  0x10   : > { %p1156_p10 = pnand %p1155_p9, %p41_p1  ;;  %s147_s5 = sshll.u32 %s1381_s4, 4  ;;  %s148_s5 = int_to_ptr.vmem [resolvable:$true] %s147_s5 }
  0x11   : > { %s27_s7 = sadd.s32 1, %s1372_s14  ;;  %s24_s8 = ssub.s32 %s1376_s15, %s1462_s6 }
  0x12   : > { %1158 = dma.hbm_to_vmem [thread:$0]  (!%p1156_p10), %s131_s22, 4096, %s133_s25, [#allocation6], %s1379_s29, %s1379_s29, %s1380_s30  }
  0x13   : > { %1161 = dma.hbm_to_vmem [thread:$0]  (!%p1156_p10), %s146_s28, 32, %s148_s5, [#allocation6]  }
  0x14   : > { %p34_p12 = scmp.ne.s32.totalorder %s1372_s14, %s1368_s13  ;;  %p25_p13 = scmp.eq.s32.totalorder %s24_s8, 0 }
  0x15   : > { %p35_p0 = scmp.eq.s32.totalorder %s1376_s15, 0  ;;  %p1172_p5 = scmp.lt.s32.totalorder %s1376_s15, 2 }
  0x16   : > { %p1472_p3 = por %p106_p2, %p34_p12  ;;  %s158_s11 = sand.u32 1, %s1372_s14  }
  0x17   : > { %s1478_s10 = scalar_select %p25_p13, %s1372_s14, %s27_s7  }
  0x18   : > { %p36_p7 = por %p35_p0, %p34_p12  ;;  %s1126_s17 = sshll.u32 %s158_s11, 4 }
  0x19   : > { %s1140_s20 = sshll.u32 %s1376_s15, 4  ;;  %s162_s25 = scalar_lea.vmem [#allocation2], %s1126_s17 }
  0x1a   : > { %s167_s24 = scalar_lea.hbm %s2087_s0, %s1140_s20  ;;  %s170_s26 = sshll.u32 %s162_s25, 4  ;;  %s171_s26 = int_to_ptr.vmem [resolvable:$true] %s170_s26 }
  0x1b   : > { %s168_s27 = sshll.u32 %s167_s24, 4  ;;  %p1485_p2 = pnand %p1172_p5, %p36_p7  ;;  %s169_s27 = int_to_ptr.hbm [resolvable:$true] %s168_s27 }
  0x1c   : > { %s159_s29 = scalar_lea.sflag [#allocation3], %s158_s11  ;;  %s1276_s30 = sshra.s32 %s169_s27, 4  ;;  %s1277_s30 = int_to_ptr.hbm [resolvable:$true] %s1276_s30 }
  0x1d   : > { %s1278_s4 = scalar_lea.hbm %s1277_s30, 16  ;;  %p1280_p10 = pneg %p1485_p2 }
  0x1e   : > { %p1279_p9 = scmp.ne.s32.totalorder %s1277_s30, %s1278_s4  ;;  %s1283_s8 = scalar_lea.hbm %s2087_s0, 32 }
  0x1f   : > { %p1284_p0 = scmp.lt.s32.totalorder %s1277_s30, %s2087_s0  ;;  %p1285_p5 = scmp.lt.s32.totalorder %s1283_s8, %s1278_s4 }
  0x20   : > { %p1281_p12 = pnand %p1280_p10, %p1279_p9 }
  0x21   : > { %p1286_p7 = por %p1285_p5, %p1284_p0 }
  0x22   : > { %p1282_p13 = pneg %p1281_p12 }
  0x24   : > { %p1287_p11 = pnand %p1286_p7, %p1282_p13 }
  0x26   : > { %1290 = shalt.err (!%p1287_p11)
}
  0x27   : > { %s1382_s11 = smov 128   ;;  %s1383_s21 = smov 8  }
  0x28   : > { %1165 = dma.hbm_to_vmem [thread:$0]  (!%p1485_p2), %s169_s27, 256, %s171_s26, %s159_s29, %s1382_s11, %s1382_s11, %s1383_s21  }
  0x29   : > { %182 = sbr.rel (%p1449_p8) target bundleno = 309 (0x135), region = 32 }
  0x2e   : > { %s1502_s22 = sand.u32 1, %s1368_s13  }
  0x2f   : > { %s1130_s24 = sshll.u32 %s1502_s22, 4  ;;  %s185_s25 = scalar_lea.sflag [#allocation3], %s1502_s22 }
  0x30   : > { %s1506_s30 = scalar_lea.vmem [#allocation2], %s1130_s24 }
  0x31   : > { %1351 = dma.done.wait (%p1436_p4), %s185_s25, 256  }
  0x32   : > { %1353 = vsyncadd (%p1436_p4), %s185_s25, 4294967040 }
  0x33   : > { %1355 = dma.done.wait (%p41_p1), [#allocation6], 4128  }
  0x34   : > { %1357 = vsyncadd (%p41_p1), [#allocation6], 4294963168  ;;  %v256_v0 = vld [vmem:[#allocation5 + $0xf0] sm:$0xff]  ;;  %v254_v1 = vld [vmem:[#allocation5 + $0xe0] sm:$0xff]  ;;  %s1133_s18 = sshll.u32 %s1502_s22, 5  ;;  %s1142_s26 = sshll.u32 %s1427_s16, 5 }
  0x35   : > { %v252_v2 = vld [vmem:[#allocation5 + $0xd0] sm:$0xff]  ;;  %v1516_v3 = vand.u32 4294901760, %v256_v0  ;;  %v1518_v4 = vand.u32 4294901760, %v254_v1  ;;  %v250_v6 = vld [vmem:[#allocation5 + $0xc0] sm:$0xff]  ;;  %v257_v59 = vld [vmem:[#allocation5 + $0xf8] sm:$0xff]  ;;  %s2047_s23 = scalar_lea.vmem [#allocation8], %s1133_s18  ;;  %s1025_s29 = scalar_lea.hbm %s2090_s3, %s1142_s26 }
  0x36   : > { %v1520_v5 = vand.u32 4294901760, %v252_v2  ;;  %v248_v7 = vld [vmem:[#allocation5 + $0xb0] sm:$0xff]  ;;  %v246_v8 = vld [vmem:[#allocation5 + $0xa0] sm:$0xff]  ;;  %v1522_v9 = vand.u32 4294901760, %v250_v6  ;;  %s1026_s4 = sshll.u32 %s2047_s23, 4  ;;  %s1028_s5 = sshll.u32 %s1025_s29, 4  ;;  %s1027_s4 = int_to_ptr.vmem [resolvable:$true] %s1026_s4  ;;  %s1029_s5 = int_to_ptr.hbm [resolvable:$true] %s1028_s5 }
  0x37   : > { %v1524_v10 = vand.u32 4294901760, %v248_v7  ;;  %v1526_v11 = vand.u32 4294901760, %v246_v8  ;;  %v244_v12 = vld [vmem:[#allocation5 + $0x90] sm:$0xff]  ;;  %v242_v13 = vld [vmem:[#allocation5 + $0x80] sm:$0xff]  ;;  %265 = vmatpush.msra.mxu0 %v1516_v3  ;;  %v1530_v14 = vsub.f32 %v256_v0, %v1516_v3  ;;  %v1533_v15 = vsub.f32 %v254_v1, %v1518_v4  ;;  %478 = vmatpush.msra.mxu3 %v1516_v3  ;;  %s1013_s16 = scalar_lea.sflag [#allocation4], %s1502_s22  ;;  %s1320_s7 = sshra.s32 %s1029_s5, 4  ;;  %s1321_s7 = int_to_ptr.hbm [resolvable:$true] %s1320_s7 }
  0x38   : > { %v1537_v16 = vsub.f32 %v252_v2, %v1520_v5  ;;  %v1539_v17 = vand.u32 4294901760, %v244_v12  ;;  %v1542_v18 = vsub.f32 %v250_v6, %v1522_v9  ;;  %v240_v21 = vld [vmem:[#allocation5 + $0x70] sm:$0xff]  ;;  %v1555_v25 = vand.u32 4294901760, %v242_v13  ;;  %v238_v26 = vld [vmem:[#allocation5 + $0x60] sm:$0xff]  ;;  %v255_v2 = vld [vmem:[#allocation5 + $0xe8] sm:$0xff]  ;;  %s1322_s8 = scalar_lea.hbm %s1321_s7, 32  ;;  %p1327_p11 = scmp.lt.s32.totalorder %s1321_s7, %s2090_s3 }
  0x39   : > { %v1545_v19 = vsub.f32 %v248_v7, %v1524_v10  ;;  %v1548_v20 = vsub.f32 %v246_v8, %v1526_v11  ;;  %267 = vmatpush.msra.mxu0 %v1518_v4  ;;  %420 = vmatpush.msra.mxu2 %v1530_v14  ;;  %v315_v22 = vand.u32 4294901760, %v1530_v14  ;;  %v2106_v23 = vand.u32 4294901760, %v1533_v15  ;;  %v236_v36 = vld [vmem:[#allocation5 + $0x50] sm:$0xff]  ;;  %v234_v42 = vld [vmem:[#allocation5 + $0x40] sm:$0xff]  ;;  %p1323_p1 = scmp.ne.s32.totalorder %s1321_s7, %s1322_s8  ;;  %s1326_s11 = scalar_lea.hbm %s2090_s3, 64 }
  0x3a   : > { %v2104_v24 = vand.u32 4294901760, %v1537_v16  ;;  %480 = vmatpush.msra.mxu3 %v1518_v4  ;;  %v2103_v27 = vand.u32 4294901760, %v1542_v18  ;;  %v1561_v29 = vsub.f32 %v244_v12, %v1539_v17  ;;  %v1574_v33 = vand.u32 4294901760, %v240_v21  ;;  %v232_v47 = vld [vmem:[#allocation5 + $0x30] sm:$0xff]  ;;  %v230_v54 = vld [vmem:[#allocation5 + $0x20] sm:$0xff]  ;;  %p1328_p2 = scmp.lt.s32.totalorder %s1326_s11, %s1322_s8 }
  0x3b   : > { %v2100_v28 = vand.u32 4294901760, %v1545_v19  ;;  %269 = vmatpush.msra.mxu0 %v1520_v5  ;;  %423 = vmatpush.msra.mxu2 %v1533_v15  ;;  %v316_v30 = vsub.f32 %v1530_v14, %v315_v22  ;;  %v322_v31 = vsub.f32 %v1533_v15, %v2106_v23  ;;  %v1577_v34 = vand.u32 4294901760, %v238_v26  ;;  %v228_v61 = vld [vmem:[#allocation5 + $0x10] sm:$0xff]  ;;  %v226_v7 = vld [vmem:[#allocation5] sm:$0xff]  ;;  %v239_v23 = vld [vmem:[#allocation5 + $0x68] sm:$0xff]  ;;  %p1324_p4 = pnand %p1323_p1, %p1472_p3 }
  0x3c   : > { %v328_v32 = vsub.f32 %v1537_v16, %v2104_v24  ;;  %482 = vmatpush.msra.mxu3 %v1520_v5  ;;  %v2098_v35 = vand.u32 4294901760, %v1548_v20  ;;  %v334_v39 = vsub.f32 %v1542_v18, %v2103_v27  ;;  %v1586_v40 = vsub.f32 %v242_v13, %v1555_v25  ;;  %p1329_p9 = por %p1328_p2, %p1327_p11 }
  0x3d   : > { %271 = vmatpush.msra.mxu0 %v1522_v9  ;;  %v317_v37 = vand.u32 4294901760, %v316_v30  ;;  %426 = vmatpush.msra.mxu2 %v1537_v16  ;;  %v323_v38 = vand.u32 4294901760, %v322_v31  ;;  %v340_v41 = vsub.f32 %v1545_v19, %v2100_v28  ;;  %v1593_v44 = vand.u32 4294901760, %v236_v36  ;;  %v241_v28 = vld [vmem:[#allocation5 + $0x78] sm:$0xff]  ;;  %p1325_p8 = pneg %p1324_p4 }
  0x3e   : > { %484 = vmatpush.msra.mxu3 %v1522_v9  ;;  %v329_v43 = vand.u32 4294901760, %v328_v32  ;;  %v2097_v45 = vand.u32 4294901760, %v1561_v29  ;;  %v1597_v46 = vsub.f32 %v240_v21, %v1574_v33  ;;  %v1602_v48 = vsub.f32 %v238_v26, %v1577_v34  ;;  %v253_v32 = vld [vmem:[#allocation5 + $0xd8] sm:$0xff] }
  0x3f   : > { %273 = vmatpush.msra.mxu0 %v1524_v10  ;;  %318 = vmatpush.msra.mxu1 %v317_v37  ;;  %v335_v49 = vand.u32 4294901760, %v334_v39  ;;  %v346_v50 = vsub.f32 %v1548_v20, %v2098_v35  ;;  %v1608_v51 = vand.u32 4294901760, %v234_v42  ;;  %v2096_v52 = vand.u32 4294901760, %v1586_v40  ;;  %p1330_p10 = pnand %p1329_p9, %p1325_p8 }
  0x40   : > { %429 = vmatpush.msra.mxu2 %v1542_v18  ;;  %486 = vmatpush.msra.mxu3 %v1524_v10  ;;  %v1613_v53 = vand.u32 4294901760, %v232_v47  ;;  %v341_v55 = vand.u32 4294901760, %v340_v41  ;;  %v352_v56 = vsub.f32 %v1561_v29, %v2097_v45  ;;  %v2095_v57 = vand.u32 4294901760, %v1597_v46 }
  0x41   : > { %275 = vmatpush.msra.mxu0 %v1526_v11  ;;  %324 = vmatpush.msra.mxu1 %v323_v38  ;;  %v1621_v58 = vsub.f32 %v236_v36, %v1593_v44  ;;  %v2093_v60 = vand.u32 4294901760, %v1602_v48  ;;  %v347_v62 = vand.u32 4294901760, %v346_v50  ;;  %v358_v63 = vsub.f32 %v1586_v40, %v2096_v52 }
  0x42   : > { %432 = vmatpush.msra.mxu2 %v1545_v19  ;;  %488 = vmatpush.msra.mxu3 %v1526_v11  ;;  %v1630_v0 = vand.u32 4294901760, %v230_v54  ;;  %v1633_v1 = vsub.f32 %v234_v42, %v1608_v51  ;;  %v1638_v6 = vsub.f32 %v232_v47, %v1613_v53  ;;  %v1640_v8 = vand.u32 4294901760, %v257_v59 }
  0x43   : > { %277 = vmatpush.msra.mxu0 %v1539_v17  ;;  %330 = vmatpush.msra.mxu1 %v329_v43  ;;  %v353_v12 = vand.u32 4294901760, %v352_v56  ;;  %v364_v13 = vsub.f32 %v1597_v46, %v2095_v57  ;;  %v1646_v21 = vand.u32 4294901760, %v228_v61  ;;  %v2092_v26 = vand.u32 4294901760, %v1621_v58  ;;  %v251_v43 = vld [vmem:[#allocation5 + $0xc8] sm:$0xff]  ;;  %v245_v57 = vld [vmem:[#allocation5 + $0x98] sm:$0xff] }
  0x44   : > { %435 = vmatpush.msra.mxu2 %v1548_v20  ;;  %490 = vmatpush.msra.mxu3 %v1539_v17  ;;  %v370_v30 = vsub.f32 %v1602_v48, %v2093_v60  ;;  %v1654_v31 = vand.u32 4294901760, %v255_v2  ;;  %v359_v36 = vand.u32 4294901760, %v358_v63  ;;  %v1657_v37 = vand.u32 4294901760, %v226_v7 }
  0x45   : > { %279 = vmatpush.msra.mxu0 %v1555_v25  ;;  %336 = vmatpush.msra.mxu1 %v335_v49  ;;  %v2091_v38 = vand.u32 4294901760, %v1633_v1  ;;  %v1661_v39 = vsub.f32 %v230_v54, %v1630_v0  ;;  %v2094_v41 = vand.u32 4294901760, %v1638_v6  ;;  %v1667_v42 = vsub.f32 %v257_v59, %v1640_v8  ;;  %v249_v59 = vld [vmem:[#allocation5 + $0xb8] sm:$0xff] }
  0x46   : > { %438 = vmatpush.msra.mxu2 %v1561_v29  ;;  %492 = vmatpush.msra.mxu3 %v1555_v25  ;;  %2116 = vst [vmem:[#allocation12_spill] sm:$0xff] %v1657_v37  ;;  %v365_v47 = vand.u32 4294901760, %v364_v13  ;;  %v376_v49 = vsub.f32 %v1621_v58, %v2092_v26  ;;  %v1674_v50 = vsub.f32 %v228_v61, %v1646_v21  ;;  %v1676_v54 = vand.u32 4294901760, %v253_v32  ;;  %v247_v13 = vld [vmem:[#allocation5 + $0xa8] sm:$0xff] }
  0x47   : > { %281 = vmatpush.msra.mxu0 %v1574_v33  ;;  %342 = vmatpush.msra.mxu1 %v341_v55  ;;  %v371_v55 = vand.u32 4294901760, %v370_v30  ;;  %v1681_v56 = vsub.f32 %v255_v2, %v1654_v31  ;;  %v2099_v61 = vand.u32 4294901760, %v1661_v39  ;;  %v1689_v63 = vsub.f32 %v226_v7, %v1657_v37 }
  0x48   : > { %441 = vmatpush.msra.mxu2 %v1586_v40  ;;  %494 = vmatpush.msra.mxu3 %v1574_v33  ;;  %v388_v2 = vsub.f32 %v1638_v6, %v2094_v41  ;;  %v2101_v30 = vand.u32 4294901760, %v1667_v42  ;;  %v2102_v7 = vand.u32 4294901760, %v1674_v50  ;;  %v1704_v26 = vand.u32 4294901760, %v249_v59 }
  0x49   : > { %283 = vmatpush.msra.mxu0 %v1577_v34  ;;  %348 = vmatpush.msra.mxu1 %v347_v62  ;;  %v382_v62 = vsub.f32 %v1633_v1, %v2091_v38  ;;  %v1702_v38 = vsub.f32 %v253_v32, %v1676_v54  ;;  %v2105_v60 = vand.u32 4294901760, %v1681_v56  ;;  %v1709_v41 = vand.u32 4294901760, %v247_v13 }
  0x4a   : > { %444 = vmatpush.msra.mxu2 %v1597_v46  ;;  %496 = vmatpush.msra.mxu3 %v1577_v34  ;;  %v394_v32 = vsub.f32 %v1661_v39, %v2099_v61  ;;  %v389_v45 = vand.u32 4294901760, %v388_v2  ;;  %v688_v35 = vsub.f32 %v1667_v42, %v2101_v30  ;;  %v1730_v61 = vsub.f32 %v249_v59, %v1704_v26 }
  0x4b   : > { %285 = vmatpush.msra.mxu0 %v1593_v44  ;;  %354 = vmatpush.msra.mxu1 %v353_v12  ;;  %v1691_v12 = vand.u32 4294901760, %v251_v43  ;;  %v1732_v2 = vand.u32 4294901760, %v245_v57  ;;  %v1740_v30 = vsub.f32 %v247_v13, %v1709_v41  ;;  %v1752_v13 = vand.u32 4294901760, %v241_v28 }
  0x4c   : > { %447 = vmatpush.msra.mxu2 %v1602_v48  ;;  %498 = vmatpush.msra.mxu3 %v1593_v44 }
  0x4d   : > { %287 = vmatpush.msra.mxu0 %v1608_v51  ;;  %360 = vmatpush.msra.mxu1 %v359_v36  ;;  %v377_v36 = vand.u32 4294901760, %v376_v49  ;;  %v2107_v49 = vand.u32 4294901760, %v1689_v63  ;;  %v1717_v52 = vsub.f32 %v251_v43, %v1691_v12  ;;  %v2108_v43 = vand.u32 4294901760, %v1702_v38 }
  0x4e   : > { %450 = vmatpush.msra.mxu2 %v1621_v58  ;;  %500 = vmatpush.msra.mxu3 %v1608_v51  ;;  %v1760_v14 = vsub.f32 %v245_v57, %v1732_v2 }
  0x4f   : > { %289 = vmatpush.msra.mxu0 %v1613_v53  ;;  %366 = vmatpush.msra.mxu1 %v365_v47  ;;  %v383_v47 = vand.u32 4294901760, %v382_v62  ;;  %v400_v62 = vsub.f32 %v1674_v50, %v2102_v7  ;;  %v395_v7 = vand.u32 4294901760, %v394_v32  ;;  %v406_v59 = vsub.f32 %v1689_v63, %v2107_v49 }
  0x50   : > { %453 = vmatpush.msra.mxu2 %v1633_v1  ;;  %502 = vmatpush.msra.mxu3 %v1613_v53  ;;  %v700_v32 = vsub.f32 %v1702_v38, %v2108_v43  ;;  %v2118_v43 = vand.u32 4294901760, %v1717_v52 }
  0x51   : > { %291 = vmatpush.msra.mxu0 %v1630_v0  ;;  %372 = vmatpush.msra.mxu1 %v371_v55  ;;  %v243_v55 = vld [vmem:[#allocation5 + $0x88] sm:$0xff]  ;;  %v407_v27 = vand.u32 4294901760, %v406_v59 }
  0x52   : > { %456 = vmatpush.msra.mxu2 %v1638_v6  ;;  %504 = vmatpush.msra.mxu3 %v1630_v0  ;;  %v1747_v24 = vand.u32 4294901760, %v243_v55  ;;  %v706_v49 = vsub.f32 %v1717_v52, %v2118_v43  ;;  %v701_v59 = vand.u32 4294901760, %v700_v32 }
  0x53   : > { %293 = vmatpush.msra.mxu0 %v1646_v21  ;;  %378 = vmatpush.msra.mxu1 %v377_v36  ;;  %v694_v36 = vsub.f32 %v1681_v56, %v2105_v60  ;;  %v689_v60 = vand.u32 4294901760, %v688_v35 }
  0x54   : > { %459 = vmatpush.msra.mxu2 %v1661_v39  ;;  %506 = vmatpush.msra.mxu3 %v1646_v21  ;;  %v1771_v57 = vsub.f32 %v243_v55, %v1747_v24  ;;  %v707_v32 = vand.u32 4294901760, %v706_v49  ;;  %v2124_v49 = vand.u32 4294901760, %v1760_v14 }
  0x55   : > { %295 = vmatpush.msra.mxu0 %v1657_v37  ;;  %384 = vmatpush.msra.mxu1 %v383_v47  ;;  %v401_v47 = vand.u32 4294901760, %v400_v62  ;;  %v695_v35 = vand.u32 4294901760, %v694_v36  ;;  %v237_v62 = vld [vmem:[#allocation5 + $0x58] sm:$0xff]  ;;  %v1778_v36 = vsub.f32 %v241_v28, %v1752_v13  ;;  %v2122_v28 = vand.u32 4294901760, %v1740_v30 }
  0x56   : > { %462 = vmatpush.msra.mxu2 %v1674_v50  ;;  %508 = vmatpush.msra.mxu3 %v1657_v37  ;;  %v1773_v37 = vand.u32 4294901760, %v239_v23 }
  0x57   : > { %525 = vmatpush.msrb.mxu0 %v315_v22  ;;  %390 = vmatpush.msra.mxu1 %v389_v45  ;;  %v2117_v22 = vand.u32 4294901760, %v1533_v15  ;;  %v2119_v15 = vand.u32 4294901760, %v1537_v16  ;;  %v1786_v45 = vand.u32 4294901760, %v237_v62  ;;  %v2121_v16 = vand.u32 4294901760, %v1542_v18 }
  0x58   : > { %465 = vmatpush.msra.mxu2 %v1689_v63  ;;  %690 = vmatpush.msrb.mxu3 %v689_v60  ;;  %v718_v60 = vsub.f32 %v1740_v30, %v2122_v28  ;;  %v2123_v18 = vand.u32 4294901760, %v1545_v19  ;;  %v724_v28 = vsub.f32 %v1760_v14, %v2124_v49  ;;  %v2125_v19 = vand.u32 4294901760, %v1548_v20  ;;  %v229_v49 = vld [vmem:[#allocation5 + $0x18] sm:$0xff] }
  0x59   : > { %529 = vmatpush.msrb.mxu0 %v2117_v22  ;;  %396 = vmatpush.msra.mxu1 %v395_v7  ;;  %v224_v7 = vld [vmem:[%s1506_s30] sm:$0xff]  ;;  %v2120_v22 = vand.u32 4294901760, %v1730_v61  ;;  %v2127_v20 = vand.u32 4294901760, %v1561_v29  ;;  %v2129_v29 = vand.u32 4294901760, %v1586_v40  ;;  %v2131_v40 = vand.u32 4294901760, %v1597_v46 }
  0x5a   : > { %637 = vmatpush.msrb.mxu2 %v1640_v8  ;;  %696 = vmatpush.msrb.mxu3 %v695_v35  ;;  %v1798_v55 = vand.u32 4294901760, %v224_v7 }
  0x5b   : > { %533 = vmatpush.msrb.mxu0 %v2119_v15  ;;  %402 = vmatpush.msra.mxu1 %v401_v47  ;;  %v712_v43 = vsub.f32 %v1730_v61, %v2120_v22  ;;  %v235_v47 = vld [vmem:[#allocation5 + $0x48] sm:$0xff]  ;;  %v1796_v22 = vsub.f32 %v239_v23, %v1773_v37  ;;  %v1811_v15 = vsub.f32 %v237_v62, %v1786_v45 }
  0x5c   : > { %639 = vmatpush.msrb.mxu2 %v1654_v31  ;;  %702 = vmatpush.msrb.mxu3 %v701_v59  ;;  %v1808_v23 = vand.u32 4294901760, %v235_v47  ;;  %v2126_v59 = vand.u32 4294901760, %v1771_v57  ;;  %v1822_v62 = vsub.f32 %v224_v7, %v1798_v55 }
  0x5d   : > { %537 = vmatpush.msrb.mxu0 %v2121_v16  ;;  %408 = vmatpush.msra.mxu1 %v407_v27  ;;  %v233_v16 = vld [vmem:[#allocation5 + $0x38] sm:$0xff]  ;;  %v713_v27 = vand.u32 4294901760, %v712_v43 }
  0x5e   : > { %641 = vmatpush.msrb.mxu2 %v1676_v54  ;;  %708 = vmatpush.msrb.mxu3 %v707_v32  ;;  %v730_v43 = vsub.f32 %v1771_v57, %v2126_v59  ;;  %v1824_v35 = vand.u32 4294901760, %v233_v16  ;;  %v725_v32 = vand.u32 4294901760, %v724_v28  ;;  %v1835_v7 = vsub.f32 %v235_v47, %v1808_v23 }
  0x5f   : > { %541 = vmatpush.msrb.mxu0 %v2123_v18  ;;  %596 = vmatpush.msrb.mxu1 %v1516_v3  ;;  %v719_v3 = vand.u32 4294901760, %v718_v60  ;;  %v231_v18 = vld [vmem:[#allocation5 + $0x28] sm:$0xff]  ;;  %v1848_v47 = vand.u32 4294901760, %v1822_v62 }
  0x60   : > { %643 = vmatpush.msrb.mxu2 %v1691_v12  ;;  %714 = vmatpush.msrb.mxu3 %v713_v27  ;;  %v1837_v59 = vand.u32 4294901760, %v231_v18  ;;  %v2130_v27 = vand.u32 4294901760, %v1796_v22 }
  0x61   : > { %545 = vmatpush.msrb.mxu0 %v2125_v19  ;;  %598 = vmatpush.msrb.mxu1 %v1518_v4  ;;  %v2128_v4 = vand.u32 4294901760, %v1778_v36  ;;  %v2110_v19 = vand.u32 4294901760, %v1811_v15 }
  0x62   : > { %645 = vmatpush.msrb.mxu2 %v1704_v26  ;;  %720 = vmatpush.msrb.mxu3 %v719_v3  ;;  %v742_v28 = vsub.f32 %v1796_v22, %v2130_v27  ;;  %v227_v3 = vld [vmem:[#allocation5 + $0x8] sm:$0xff]  ;;  %v753_v27 = vand.u32 4294901760, %v1835_v7 }
  0x63   : > { %549 = vmatpush.msrb.mxu0 %v2127_v20  ;;  %600 = vmatpush.msrb.mxu1 %v1520_v5  ;;  %v736_v60 = vsub.f32 %v1778_v36, %v2128_v4  ;;  %v225_v5 = vld [vmem:[%s1506_s30 + $0x8] sm:$0xff]  ;;  %v731_v20 = vand.u32 4294901760, %v730_v43  ;;  %v1851_v4 = vsub.f32 %v233_v16, %v1824_v35  ;;  %v748_v43 = vsub.f32 %v1811_v15, %v2110_v19 }
  0x64   : > { %647 = vmatpush.msrb.mxu2 %v1709_v41  ;;  %726 = vmatpush.msrb.mxu3 %v725_v32  ;;  %v1864_v16 = vsub.f32 %v231_v18, %v1837_v59  ;;  %v1866_v46 = vand.u32 4294901760, %v225_v5  ;;  %v299_v32 = vsub.f32 %v1822_v62, %v1848_v47  ;;  %v1875_v19 = vand.u32 4294901760, %v227_v3 }
  0x65   : > { %553 = vmatpush.msrb.mxu0 %v2129_v29  ;;  %602 = vmatpush.msrb.mxu1 %v1522_v9  ;;  %v737_v9 = vand.u32 4294901760, %v736_v60  ;;  %v1856_v29 = vand.u32 4294901760, %v229_v49  ;;  %v743_v60 = vand.u32 4294901760, %v742_v28  ;;  %v2133_v18 = vand.u32 4294901760, %v1621_v58 }
  0x66   : > { %649 = vmatpush.msrb.mxu2 %v1732_v2  ;;  %732 = vmatpush.msrb.mxu3 %v731_v20  ;;  %v754_v20 = vsub.f32 %v1835_v7, %v753_v27  ;;  %v765_v28 = vand.u32 4294901760, %v1864_v16  ;;  %v2134_v58 = vand.u32 4294901760, %v1633_v1 }
  0x67   : > { %557 = vmatpush.msrb.mxu0 %v2131_v40  ;;  %604 = vmatpush.msrb.mxu1 %v1524_v10  ;;  %v2132_v10 = vand.u32 4294901760, %v1602_v48  ;;  %v759_v40 = vand.u32 4294901760, %v1851_v4  ;;  %v1881_v48 = vsub.f32 %v229_v49, %v1856_v29 }
  0x68   : > { %651 = vmatpush.msrb.mxu2 %v1747_v24  ;;  %738 = vmatpush.msrb.mxu3 %v737_v9  ;;  %v1901_v9 = vsub.f32 %v227_v3, %v1875_v19  ;;  %v2136_v3 = vand.u32 4294901760, %v1661_v39 }
  0x69   : > { %561 = vmatpush.msrb.mxu0 %v2132_v10  ;;  %606 = vmatpush.msrb.mxu1 %v1526_v11  ;;  %v749_v11 = vand.u32 4294901760, %v748_v43  ;;  %v1889_v10 = vsub.f32 %v225_v5, %v1866_v46  ;;  %v760_v49 = vsub.f32 %v1851_v4, %v759_v40  ;;  %v2135_v5 = vand.u32 4294901760, %v1638_v6 }
  0x6a   : > { %653 = vmatpush.msrb.mxu2 %v1752_v13  ;;  %744 = vmatpush.msrb.mxu3 %v743_v60  ;;  %v771_v1 = vand.u32 4294901760, %v1881_v48  ;;  %v766_v43 = vsub.f32 %v1864_v16, %v765_v28  ;;  %v777_v6 = vand.u32 4294901760, %v1901_v9 }
  0x6b   : > { %565 = vmatpush.msrb.mxu0 %v2133_v18  ;;  %608 = vmatpush.msrb.mxu1 %v1539_v17  ;;  %v1895_v17 = vand.u32 4294901760, %v299_v32  ;;  %v1912_v60 = vand.u32 4294901760, %v1889_v10  ;;  %v2137_v32 = vand.u32 4294901760, %v1674_v50 }
  0x6c   : > { %655 = vmatpush.msrb.mxu2 %v1773_v37  ;;  %750 = vmatpush.msrb.mxu3 %v749_v11  ;;  %v772_v18 = vsub.f32 %v1881_v48, %v771_v1  ;;  %v2138_v11 = vand.u32 4294901760, %v1689_v63  ;;  %v2142_v63 = vand.u32 4294901760, %v1702_v38 }
  0x6d   : > { %569 = vmatpush.msrb.mxu0 %v2134_v58  ;;  %610 = vmatpush.msrb.mxu1 %v1555_v25  ;;  %v755_v25 = vand.u32 4294901760, %v754_v20  ;;  %v307_v39 = vsub.f32 %v1889_v10, %v1912_v60 }
  0x6e   : > { %657 = vmatpush.msrb.mxu2 %v1786_v45  ;;  %301 = vmatmul.f32.vlgmr.msra.gmra.mxu0 %v1895_v17  ;;  %v773_v50 = vand.u32 4294901760, %v772_v18 }
  0x6f   : > { %573 = vmatpush.msrb.mxu0 %v2135_v5  ;;  %612 = vmatpush.msrb.mxu1 %v1574_v33  ;;  %v761_v33 = vand.u32 4294901760, %v760_v49  ;;  %v1939_v20 = vand.u32 4294901760, %v307_v39 }
  0x70   : > { %659 = vmatpush.msrb.mxu2 %v1808_v23  ;;  %756 = vmatpush.msrb.mxu3 %v755_v25 }
  0x71   : > { %577 = vmatpush.msrb.mxu0 %v2136_v3  ;;  %614 = vmatpush.msrb.mxu1 %v1577_v34  ;;  %v767_v34 = vand.u32 4294901760, %v766_v43 }
  0x72   : > { %661 = vmatpush.msrb.mxu2 %v1824_v35  ;;  %410 = vmatmul.f32.vlgmr.msra.gmra.mxu1 %v1798_v55 }
  0x73   : > { %581 = vmatpush.msrb.mxu0 %v2137_v32  ;;  %616 = vmatpush.msrb.mxu1 %v1593_v44  ;;  %v778_v44 = vsub.f32 %v1901_v9, %v777_v6 }
  0x74   : > { %663 = vmatpush.msrb.mxu2 %v1837_v59  ;;  %762 = vmatpush.msrb.mxu3 %v761_v33 }
  0x75   : > { %585 = vmatpush.msrb.mxu0 %v2138_v11  ;;  %618 = vmatpush.msrb.mxu1 %v1608_v51  ;;  %v779_v51 = vand.u32 4294901760, %v778_v44 }
  0x76   : > { %665 = vmatpush.msrb.mxu2 %v1856_v29  ;;  %768 = vmatpush.msrb.mxu3 %v767_v34 }
  0x77   : > { %792 = vmatpush.msra.mxu0 %v1667_v42  ;;  %620 = vmatpush.msrb.mxu1 %v1613_v53  ;;  %v2139_v53 = vand.u32 4294901760, %v1667_v42  ;;  %v2141_v42 = vld [vmem:[#allocation12_spill] sm:$0xff] }
  0x78   : > { %468 = vmatmul.f32.vlgmr.msra.gmra.mxu2 %v1822_v62  ;;  %774 = vmatpush.msrb.mxu3 %v773_v50 }
  0x79   : > { %795 = vmatpush.msra.mxu0 %v1681_v56  ;;  %622 = vmatpush.msrb.mxu1 %v1630_v0  ;;  %v2140_v0 = vand.u32 4294901760, %v1681_v56 }
  0x7a   : > { %667 = vmatpush.msrb.mxu2 %v1875_v19  ;;  %309 = vmatmul.f32.gmra.mxu0 %v1939_v20 }
  0x7b   : > { %798 = vmatpush.msra.mxu0 %v1702_v38  ;;  %512 = vmatmul.f32.vlgmr.msra.gmra.mxu3 %v1848_v47  ;;  %v2144_v38 = vand.u32 4294901760, %v1730_v61 }
  0x7c   : > { %897 = vmatpush.msra.mxu2 %v2139_v53  ;;  %624 = vmatpush.msrb.mxu1 %v1646_v21  ;;  %v2143_v21 = vand.u32 4294901760, %v1717_v52 }
  0x7d   : > { %780 = vmatpush.msrb.mxu3 %v779_v51  ;;  %801 = vmatpush.msra.mxu0 %v1717_v52  ;;  %v2145_v52 = vand.u32 4294901760, %v1740_v30 }
  0x7e   : > { %901 = vmatpush.msra.mxu2 %v2140_v0  ;;  %414 = vmatmul.f32.gmra.mxu1 %v1866_v46 }
  0x7f   : > { %968 = vmatpush.msra.mxu3 %v1640_v8  ;;  %804 = vmatpush.msra.mxu0 %v1730_v61 }
  0x80   : > { %626 = vmatpush.msrb.mxu1 %v2141_v42  ;;  %905 = vmatpush.msra.mxu2 %v2142_v63 }
  0x81   : > { %970 = vmatpush.msra.mxu3 %v1654_v31  ;;  %807 = vmatpush.msra.mxu0 %v1740_v30 }
  0x82   : > { %850 = vmatpush.msra.mxu1 %v1640_v8  ;;  %909 = vmatpush.msra.mxu2 %v2143_v21  ;;  %v2146_v8 = vand.u32 4294901760, %v1760_v14 }
  0x83   : > { %972 = vmatpush.msra.mxu3 %v1676_v54  ;;  %473 = vmatmul.f32.gmra.mxu2 %v1889_v10 }
  0x84   : > { %852 = vmatpush.msra.mxu1 %v1654_v31  ;;  %810 = vmatpush.msra.mxu0 %v1760_v14  ;;  %v2147_v31 = vand.u32 4294901760, %v1771_v57 }
  0x85   : > { %913 = vmatpush.msra.mxu2 %v2144_v38  ;;  %974 = vmatpush.msra.mxu3 %v1691_v12 }
  0x86   : > { %854 = vmatpush.msra.mxu1 %v1676_v54  ;;  %587 = vmatmul.f32.vlgmr.msrb.gmra.mxu0 %v1798_v55  ;;  %v2150_v54 = vand.u32 4294901760, %v1811_v15 }
  0x87   : > { %518 = vmatmul.f32.gmra.mxu3 %v1912_v60  ;;  %813 = vmatpush.msra.mxu0 %v1771_v57 }
  0x88   : > { %856 = vmatpush.msra.mxu1 %v1691_v12  ;;  %917 = vmatpush.msra.mxu2 %v2145_v52 }
  0x89   : > { %976 = vmatpush.msra.mxu3 %v1704_v26  ;;  %628 = vmatmul.f32.vlgmr.msrb.gmra.mxu1 %v1798_v55 }
  0x8a   : > { %816 = vmatpush.msra.mxu0 %v1778_v36  ;;  %858 = vmatpush.msra.mxu1 %v1704_v26  ;;  %v2148_v26 = vand.u32 4294901760, %v1778_v36 }
  0x8b   : > { %921 = vmatpush.msra.mxu2 %v2146_v8  ;;  %978 = vmatpush.msra.mxu3 %v1709_v41 }
  0x8c   : > { %819 = vmatpush.msra.mxu0 %v1796_v22  ;;  %860 = vmatpush.msra.mxu1 %v1709_v41  ;;  %v2149_v41 = vand.u32 4294901760, %v1796_v22 }
  0x8d   : > { %925 = vmatpush.msra.mxu2 %v2147_v31  ;;  %980 = vmatpush.msra.mxu3 %v1732_v2 }
  0x8e   : > { %673 = vmatmul.f32.vlgmr.msrb.gmra.mxu2 %v1895_v17  ;;  %822 = vmatpush.msra.mxu0 %v1811_v15 }
  0x8f   : > { %862 = vmatpush.msra.mxu1 %v1732_v2  ;;  %929 = vmatpush.msra.mxu2 %v2148_v26 }
  0x90   : > { %982 = vmatpush.msra.mxu3 %v1747_v24  ;;  %591 = vmatmul.f32.gmra.mxu0 %v1866_v46 }
  0x91   : > { %782 = vmatmul.f32.vlgmr.msrb.gmra.mxu3 %v1798_v55  ;;  %825 = vmatpush.msra.mxu0 %v1835_v7 }
  0x92   : > { %864 = vmatpush.msra.mxu1 %v1747_v24  ;;  %933 = vmatpush.msra.mxu2 %v2149_v41  ;;  %v258_v24 = vld [vmem:[#allocation7] sm:$0x3] }
  0x93   : > { %984 = vmatpush.msra.mxu3 %v1752_v13  ;;  %632 = vmatmul.f32.gmra.mxu1 %v1866_v46  ;;  %v260_v56 = vperm.slane %v258_v24, 0 }
  0x94   : > { %828 = vmatpush.msra.mxu0 %v1851_v4  ;;  %866 = vmatpush.msra.mxu1 %v1752_v13 }
  0x95   : > { %937 = vmatpush.msra.mxu2 %v2150_v54  ;;  %986 = vmatpush.msra.mxu3 %v1773_v37 }
  0x96   : > { %831 = vmatpush.msra.mxu0 %v1864_v16  ;;  %868 = vmatpush.msra.mxu1 %v1773_v37 }
  0x97   : > { %941 = vmatpush.msra.mxu2 %v753_v27  ;;  %988 = vmatpush.msra.mxu3 %v1786_v45 }
  0x98   : > { %681 = vmatmul.f32.gmra.mxu2 %v1939_v20  ;;  %834 = vmatpush.msra.mxu0 %v1881_v48  ;;  %v261_v48 = vperm.slane %v258_v24, 1 }
  0x99   : > { %870 = vmatpush.msra.mxu1 %v1786_v45  ;;  %945 = vmatpush.msra.mxu2 %v759_v40 }
  0x9a   : > { %990 = vmatpush.msra.mxu3 %v1808_v23  ;;  %837 = vmatpush.msra.mxu0 %v1901_v9 }
  0x9b   : > { %786 = vmatmul.f32.gmra.mxu3 %v1866_v46  ;;  %872 = vmatpush.msra.mxu1 %v1808_v23 }
  0x9c   : > { %949 = vmatpush.msra.mxu2 %v765_v28  ;;  %992 = vmatpush.msra.mxu3 %v1824_v35 }
  0x9d   : > { %840 = vmatmul.f32.vlgmr.msra.gmra.mxu0 %v1822_v62  ;;  %874 = vmatpush.msra.mxu1 %v1824_v35 }
  0x9e   : > { %953 = vmatpush.msra.mxu2 %v771_v1  ;;  %994 = vmatpush.msra.mxu3 %v1837_v59 }
  0x9f   : > { %876 = vmatpush.msra.mxu1 %v1837_v59 }
  0xa0   : > { %957 = vmatpush.msra.mxu2 %v777_v6  ;;  %996 = vmatpush.msra.mxu3 %v1856_v29 }
  0xa1   : > { %959 = vmatmul.f32.vlgmr.msra.gmra.mxu2 %v1798_v55  ;;  %878 = vmatpush.msra.mxu1 %v1856_v29 }
  0xa2   : > { %998 = vmatpush.msra.mxu3 %v1875_v19 }
  0xa3   : > { %1000 = vmatmul.f32.vlgmr.msra.gmra.mxu3 %v1798_v55  ;;  %880 = vmatpush.msra.mxu1 %v1875_v19 }
  0xa4   : > { %884 = vmatmul.f32.vlgmr.msra.gmra.mxu1 %v1848_v47 }
  0xa5   : > { %845 = vmatmul.f32.gmra.mxu0 %v1889_v10 }
  0xa9   : > { %963 = vmatmul.f32.gmra.mxu2 %v1866_v46 }
  0xab   : > { %1004 = vmatmul.f32.gmra.mxu3 %v1866_v46 }
  0xac   : > { %890 = vmatmul.f32.gmra.mxu1 %v1912_v60 }
  0xeb   : > { %v302_v37 = vpop.f32.mrf.mxu0 }
  0xec   : > { %v303_v12 = vadd.f32 %v302_v37, %v260_v56 }
  0xef   : > { %v411_v61 = vpop.f32.mrf.mxu1 }
  0xf0   : > { %v412_v30 = vadd.f32 %v411_v61, %v303_v12 }
  0xf7   : > { %v310_v2 = vpop.f32.mrf.mxu0 }
  0xf8   : > { %v311_v36 = vadd.f32 %v310_v2, %v260_v56 }
  0xfb   : > { %v469_v13 = vpop.f32.mrf.mxu2  ;;  %v415_v14 = vpop.f32.mrf.mxu1 }
  0xfc   : > { %v470_v45 = vadd.f32 %v469_v13, %v412_v30  ;;  %v416_v22 = vadd.f32 %v415_v14, %v311_v36 }
  0xfe   : > { %v513_v57 = vpop.f32.mrf.mxu3 }
  0xff   : > { %v514_v55 = vadd.f32 %v513_v57, %v470_v45 }
 0x103   : > { %v588_v15 = vpop.f32.mrf.mxu0 }
 0x104   : > { %v589_v35 = vadd.f32 %v588_v15, %v514_v55 }
 0x106   : > { %v629_v23 = vpop.f32.mrf.mxu1  ;;  %v474_v19 = vpop.f32.mrf.mxu2 }
 0x107   : > { %v630_v62 = vadd.f32 %v629_v23, %v589_v35  ;;  %v475_v7 = vadd.f32 %v474_v19, %v416_v22 }
 0x109   : > { %1008 = vst [vmem:[%s2047_s23] sm:$0xff] %v630_v62 }
 0x10a   : > { %v519_v59 = vpop.f32.mrf.mxu3 }
 0x10b   : > { %v520_v47 = vadd.f32 %v519_v59, %v475_v7 }
 0x10d   : > { %v592_v4 = vpop.f32.mrf.mxu0 }
 0x10e   : > { %v593_v29 = vadd.f32 %v592_v4, %v520_v47 }
 0x110   : > { %v633_v27 = vpop.f32.mrf.mxu1 }
 0x111   : > { %v634_v16 = vadd.f32 %v633_v27, %v593_v29  ;;  %v674_v46 = vpop.f32.mrf.mxu2 }
 0x112   : > { %v675_v28 = vadd.f32 %v674_v46, %v261_v48 }
 0x113   : > { %1010 = vst [vmem:[%s2047_s23 + $0x10] sm:$0xff] %v634_v16 }
 0x114   : > { %v783_v40 = vpop.f32.mrf.mxu3 }
 0x115   : > { %v784_v17 = vadd.f32 %v783_v40, %v675_v28 }
 0x11a   : > { %v841_v10 = vpop.f32.mrf.mxu0 }
 0x11b   : > { %v682_v58 = vpop.f32.mrf.mxu2  ;;  %v842_v9 = vadd.f32 %v841_v10, %v784_v17 }
 0x11c   : > { %v683_v1 = vadd.f32 %v682_v58, %v261_v48 }
 0x11e   : > { %v787_v49 = vpop.f32.mrf.mxu3 }
 0x11f   : > { %v788_v33 = vadd.f32 %v787_v49, %v683_v1 }
 0x121   : > { %v885_v5 = vpop.f32.mrf.mxu1 }
 0x122   : > { %v886_v25 = vadd.f32 %v885_v5, %v842_v9  ;;  %v846_v60 = vpop.f32.mrf.mxu0 }
 0x123   : > { %v847_v18 = vadd.f32 %v846_v60, %v788_v33 }
 0x124   : > { %v960_v43 = vpop.f32.mrf.mxu2 }
 0x125   : > { %v961_v3 = vadd.f32 %v960_v43, %v886_v25 }
 0x126   : > { %v1001_v6 = vpop.f32.mrf.mxu3 }
 0x127   : > { %v1002_v32 = vadd.f32 %v1001_v6, %v961_v3 }
 0x129   : > { %1009 = vst [vmem:[%s2047_s23 + $0x8] sm:$0xff] %v1002_v32  ;;  %v891_v34 = vpop.f32.mrf.mxu1 }
 0x12a   : > { %v892_v39 = vadd.f32 %v891_v34, %v847_v18 }
 0x12c   : > { %v964_v11 = vpop.f32.mrf.mxu2 }
 0x12d   : > { %v965_v44 = vadd.f32 %v964_v11, %v892_v39 }
 0x12e   : > { %v1005_v50 = vpop.f32.mrf.mxu3 }
 0x12f   : > { %v1006_v20 = vadd.f32 %v1005_v50, %v965_v44 }
 0x131   : > { %1011 = vst [vmem:[%s2047_s23 + $0x18] sm:$0xff] %v1006_v20 }
 0x132   : > { %1333 = shalt.err (!%p1330_p10)
}
 0x133   : > { %s1384_s22 = smov 256   ;;  %s1385_s25 = smov 16  }
 0x134   : > { %1153 = dma.vmem_to_hbm [thread:$0]  (%p1472_p3), %s1027_s4, 512, %s1029_s5, %s1013_s16, %s1384_s22, %s1384_s22, %s1385_s25  }
 0x135 PF: > { %s1043_s30 = sand.u32 1, %s1364_s12   ;;  %p2151_p12 = scmp.ge.s32.totalorder %s1376_s15, 2 }
 0x136   : > { %s1044_s18 = scalar_lea.sflag [#allocation4], %s1043_s30 }
 0x137   : > { %p1167_p13 = pnand %p2151_p12, %p1441_p6 }
 0x139   : > { %p1168_p0 = pneg %p1167_p13 }
 0x13b   : > { %1359 = dma.done.wait (%p1168_p0), %s1044_s18, 512  }
 0x13c   : > { %1361 = vsyncadd (%p1168_p0), %s1044_s18, 4294966784  ;;  %p17_p5 = scmp.ge.s32.totalorder %s1462_s6, 4   ;;  %s2152_s12 = smov %s1368_s13 }
 0x13d   : > { %s2153_s13 = smov %s1372_s14  ;;  %s2154_s14 = smov %s1478_s10 }
 0x13e   : > { %s2155_s15 = smov %s1462_s6  ;;  %19 = sbr.rel (!%p17_p5) target bundleno = 6 (0x6), region = 85 }
 0x143   :  { %1050 = vsyncpa [#allocation3], 1 }
 0x144   :  { %1052 = vsyncpa [#allocation3 + $0x1], 1 }
 0x145   :  { %1053 = vsyncpa [#allocation6], 1 }
 0x146   :  { %1054 = vsyncpa [#allocation4], 1 }
 0x147   :  { %1056 = vsyncpa [#allocation4 + $0x1], 1 }

</bundles_post_ra>
